<compile_context>
chip_gen: v5e
topology: v5e:2x2
jax: 0.10.0
libtpu: 0.0.40
codegen_flags: <defaults>
</compile_context>

<pallas_src>
import functools

import jax
import jax.numpy as jnp
from jax import lax
from jax.experimental import pallas as pl
from jax.experimental.pallas import tpu as pltpu

_LANES = 128
_BLOCK_ROWS = 1024            # 1024 x 128 x 4B = 512 KiB / input / buffer (f32)
_SINGLE_BLOCK_MAX_ROWS = 2048  # <= 1 MiB/input: one grid step, full-array block


def _mse_partial_kernel(sr_ref, hr_ref, out_ref, acc_ref, *,
                        block_rows, valid_rows, steps, needs_mask):
    """Per-partition partial sum of (sr-hr)^2 over row-blocks.

    Grid is (num_partitions, steps).  Each partition accumulates its blocks
    into a full-block-shaped VMEM accumulator (pure elementwise VPU work) and
    writes its partial sum (broadcast over an (8,128) slab) on its last step.
    """
    p = pl.program_id(0)
    j = pl.program_id(1)

    @pl.when(j == 0)
    def _():
        acc_ref[...] = jnp.zeros_like(acc_ref)

    d = sr_ref[...].astype(jnp.float32) - hr_ref[...].astype(jnp.float32)

    if needs_mask:
        # Last block of the last partition may extend past the real row count;
        # zero those rows before squaring (handles any garbage padding reads).
        blk = p * steps + j
        row_idx = blk * block_rows + lax.broadcasted_iota(jnp.int32, d.shape, 0)
        d = jnp.where(row_idx < valid_rows, d, jnp.float32(0.0))

    acc_ref[...] += d * d

    @pl.when(j == steps - 1)
    def _():
        total = jnp.sum(acc_ref[...])                       # one XLU reduce / partition
        out_ref[...] = jnp.zeros(out_ref.shape, jnp.float32) + total


def text_focus_loss(sr_img, hr_img, label=None):
    """MSE content term of TextFocusLoss, computed in a Pallas TPU kernel.

    sr_img, hr_img: NCHW arrays of identical shape (any float dtype).
    label: unused (kept for API parity with the PyTorch module).
    """
    # TODO(synk): the stripped reference forward() body is `pass`; the
    # attention/recognition loss terms of the original TextFocusLoss need a
    # pretrained transformer recognizer checkpoint and are not in this module.
    del label
    assert sr_img.shape == hr_img.shape, "sr_img / hr_img shape mismatch"

    n = sr_img.size
    sr_flat = sr_img.reshape(-1)
    hr_flat = hr_img.reshape(-1)

    # Only pad (a copy) in the rare case the element count is not lane-aligned.
    pad = (-n) % _LANES
    if pad:
        sr_flat = jnp.pad(sr_flat, (0, pad))
        hr_flat = jnp.pad(hr_flat, (0, pad))
    rows = (n + pad) // _LANES
    sr2 = sr_flat.reshape(rows, _LANES)
    hr2 = hr_flat.reshape(rows, _LANES)

    if rows <= _SINGLE_BLOCK_MAX_ROWS:
        block_rows = rows          # full-array block, single grid step
        nblocks = 1
    else:
        block_rows = _BLOCK_ROWS
        nblocks = pl.cdiv(rows, block_rows)

    # Split row-blocks across 2 partitions only when they divide evenly, so no
    # block is ever fully out of bounds.  On multi-core chips the 'parallel'
    # axis is sharded across TensorCores; on 1-TC chips it is just a loop.
    nparts = 2 if (nblocks >= 4 and nblocks % 2 == 0) else 1
    steps = nblocks // nparts
    needs_mask = (nblocks * block_rows) != rows

    kernel = functools.partial(
        _mse_partial_kernel,
        block_rows=block_rows, valid_rows=rows,
        steps=steps, needs_mask=needs_mask)

    partials = pl.pallas_call(
        kernel,
        out_shape=jax.ShapeDtypeStruct((nparts, 8, _LANES), jnp.float32),
        grid_spec=pltpu.PrefetchScalarGridSpec(
            num_scalar_prefetch=0,
            grid=(nparts, steps),
            in_specs=[
                pl.BlockSpec((block_rows, _LANES),
                             lambda p, j, s=steps: (p * s + j, 0)),
                pl.BlockSpec((block_rows, _LANES),
                             lambda p, j, s=steps: (p * s + j, 0)),
            ],
            out_specs=pl.BlockSpec((1, 8, _LANES), lambda p, j: (p, 0, 0)),
            scratch_shapes=[pltpu.VMEM((block_rows, _LANES), jnp.float32)],
        ),
        compiler_params=pltpu.CompilerParams(
            dimension_semantics=("parallel", "arbitrary")),
    )(sr2, hr2)

    # Finalize: sum per-partition partials, scale by precomputed 1/n.
    return jnp.sum(partials[:, 0, 0]) * jnp.float32(1.0 / n)


def _check(shape, key):
    k_sr, k_hr = jax.random.split(key)
    sr = jax.random.uniform(k_sr, shape, dtype=jnp.float32)
    hr = jax.random.uniform(k_hr, shape, dtype=jnp.float32)
    loss = text_focus_loss(sr, hr)
    jax.block_until_ready(loss)
    ref = jnp.mean((sr - hr) ** 2)
    assert jnp.allclose(loss, ref, rtol=1e-5, atol=1e-6), (shape, loss, ref)


if __name__ == "__main__":
    key = jax.random.PRNGKey(0)
    k_sr, k_hr, k_lbl, k_a, k_b = jax.random.split(key, 5)

    # Small text-SR-like shapes: batch=2, channels=3, H=16, W=64 (NCHW).
    sr_img = jax.random.uniform(k_sr, (2, 3, 16, 64), dtype=jnp.float32)
    hr_img = jax.random.uniform(k_hr, (2, 3, 16, 64), dtype=jnp.float32)
    label = jax.random.randint(k_lbl, (2, 8), 0, 63, dtype=jnp.int32)  # unused

    loss = text_focus_loss(sr_img, hr_img, label)
    jax.block_until_ready(loss)
    ref = jnp.mean((sr_img - hr_img) ** 2)
    assert jnp.allclose(loss, ref, rtol=1e-5, atol=1e-6), (loss, ref)

    # Exercise the multi-block (tiled, 1-partition) path.
    _check((2, 3, 128, 512), k_a)    # 3072 rows -> 3 blocks, no mask
    # Exercise the 2-partition + ragged-tail-mask path.
    _check((2, 4, 250, 256), k_b)    # 4000 rows -> 4 blocks, mask on last

    print("KERNEL_OK")
</pallas_src>

<mosaic_0001>
module attributes {stable_mosaic.version = 11 : i64} {
  func.func @_mse_partial_kernel(%arg0: i32, %arg1: i32, %arg2: memref<48x128xf32, #tpu.memory_space<vmem>>, %arg3: memref<48x128xf32, #tpu.memory_space<vmem>>, %arg4: memref<1x8x128xf32, #tpu.memory_space<vmem>>, %arg5: memref<48x128xf32, #tpu.memory_space<vmem>>) attributes {dimension_semantics = [#tpu.dimension_semantics<parallel>, #tpu.dimension_semantics<arbitrary>], iteration_bounds = array<i64: 1, 1>, scalar_prefetch = 0 : i64, scratch_operands = 1 : i64, tpu.core_type = #tpu.core_type<tc>, window_params = [{transform_indices = @transform_0, window_bounds = array<i64: 48, 128>}, {transform_indices = @transform_1, window_bounds = array<i64: 48, 128>}, {transform_indices = @transform_2, window_bounds = array<i64: 1, 8, 128>}]} {
    %c0_i32 = arith.constant 0 : i32
    %0 = arith.cmpi eq, %arg1, %c0_i32 : i32
    %1 = arith.extui %0 : i1 to i32
    %c0_i32_0 = arith.constant 0 : i32
    %2 = arith.cmpi ne, %1, %c0_i32_0 : i32
    scf.if %2 {
      %cst = arith.constant 0.000000e+00 : f32
      %13 = vector.broadcast %cst : f32 to vector<48x128xf32>
      %c0_10 = arith.constant 0 : index
      %c0_11 = arith.constant 0 : index
      %14 = vector.load %arg5[%c0_10, %c0_11] : memref<48x128xf32, #tpu.memory_space<vmem>>, vector<48x128xf32>
      tpu.vector_store %arg5[%c0_10, %c0_11], %13 {strides = array<i32>} : memref<48x128xf32, #tpu.memory_space<vmem>>, vector<48x128xf32>,
    } else {
    }
    %c0 = arith.constant 0 : index
    %c0_1 = arith.constant 0 : index
    %3 = vector.load %arg2[%c0, %c0_1] : memref<48x128xf32, #tpu.memory_space<vmem>>, vector<48x128xf32>
    %c0_2 = arith.constant 0 : index
    %c0_3 = arith.constant 0 : index
    %4 = vector.load %arg3[%c0_2, %c0_3] : memref<48x128xf32, #tpu.memory_space<vmem>>, vector<48x128xf32>
    %5 = arith.subf %3, %4 : vector<48x128xf32>
    %c0_4 = arith.constant 0 : index
    %c0_5 = arith.constant 0 : index
    %6 = vector.load %arg5[%c0_4, %c0_5] : memref<48x128xf32, #tpu.memory_space<vmem>>, vector<48x128xf32>
    %7 = arith.mulf %5, %5 : vector<48x128xf32>
    %8 = arith.addf %6, %7 : vector<48x128xf32>
    %c0_6 = arith.constant 0 : index
    %c0_7 = arith.constant 0 : index
    %9 = vector.load %arg5[%c0_6, %c0_7] : memref<48x128xf32, #tpu.memory_space<vmem>>, vector<48x128xf32>
    tpu.vector_store %arg5[%c0_6, %c0_7], %8 {strides = array<i32>} : memref<48x128xf32, #tpu.memory_space<vmem>>, vector<48x128xf32>,
    %c0_i32_8 = arith.constant 0 : i32
    %10 = arith.cmpi eq, %arg1, %c0_i32_8 : i32
    %11 = arith.extui %10 : i1 to i32
    %c0_i32_9 = arith.constant 0 : i32
    %12 = arith.cmpi ne, %11, %c0_i32_9 : i32
    scf.if %12 {
      %c0_10 = arith.constant 0 : index
      %c0_11 = arith.constant 0 : index
      %13 = vector.load %arg5[%c0_10, %c0_11] : memref<48x128xf32, #tpu.memory_space<vmem>>, vector<48x128xf32>
      %14 = vector.shape_cast %13 : vector<48x128xf32> to vector<1x48x128xf32>
      %cst = arith.constant dense<0.000000e+00> : vector<1xf32>
      %15 = vector.multi_reduction <add>, %14, %cst [1, 2] : vector<1x48x128xf32> to vector<1xf32>
      %16 = vector.shape_cast %15 : vector<1xf32> to vector<1x1x1xf32>
      %17 = vector.extract %16[0, 0, 0] : f32 from vector<1x1x1xf32>
      %cst_12 = arith.constant 0.000000e+00 : f32
      %18 = vector.broadcast %cst_12 : f32 to vector<1x8x128xf32>
      %19 = vector.broadcast %17 : f32 to vector<1x8x128xf32>
      %20 = arith.addf %18, %19 : vector<1x8x128xf32>
      %c0_13 = arith.constant 0 : index
      %c0_14 = arith.constant 0 : index
      %c0_15 = arith.constant 0 : index
      %21 = vector.load %arg4[%c0_13, %c0_14, %c0_15] : memref<1x8x128xf32, #tpu.memory_space<vmem>>, vector<1x8x128xf32>
      tpu.vector_store %arg4[%c0_13, %c0_14, %c0_15], %20 {strides = array<i32>} : memref<1x8x128xf32, #tpu.memory_space<vmem>>, vector<1x8x128xf32>,
    } else {
    }
    return
  }
  func.func @transform_0(%arg0: i32, %arg1: i32) -> (i32, i32) {
    %c1_i32 = arith.constant 1 : i32
    %0 = arith.muli %arg0, %c1_i32 : i32
    %1 = arith.addi %0, %arg1 : i32
    %c0_i32 = arith.constant 0 : i32
    %c0_i32_0 = arith.constant 0 : i32
    return %1, %c0_i32 : i32, i32
  }
  func.func @transform_1(%arg0: i32, %arg1: i32) -> (i32, i32) {
    %c1_i32 = arith.constant 1 : i32
    %0 = arith.muli %arg0, %c1_i32 : i32
    %1 = arith.addi %0, %arg1 : i32
    %c0_i32 = arith.constant 0 : i32
    %c0_i32_0 = arith.constant 0 : i32
    return %1, %c0_i32 : i32, i32
  }
  func.func @transform_2(%arg0: i32, %arg1: i32) -> (i32, i32, i32) {
    %c0_i32 = arith.constant 0 : i32
    %c0_i32_0 = arith.constant 0 : i32
    %c0_i32_1 = arith.constant 0 : i32
    return %arg0, %c0_i32, %c0_i32_0 : i32, i32, i32
  }
}

</mosaic_0001>

<bundles_post_ra>
// kernel: tpu_custom_call.1
= control target key start
LH: loop header
LB: loop body
LE: loop exit
PB: predicated region body
PF: predicated region fallthrough
CT: control target
= control target key end

     0   :  { %7 = vsyncpa [#allocation4], 0  ;;  %s266_s0 = inlined_call_operand.hbm [shape: f32[48,128], index: 0, kind: input, shape index: {}]   ;;  %s267_s1 = inlined_call_operand.hbm [shape: f32[48,128], index: 1, kind: input, shape index: {}]   ;;  %s268_s2 = inlined_call_operand.hbm [shape: f32[1,8,128], index: 2, kind: output, shape index: {}]  }
   0x1   :  { %8 = vsyncpa [#allocation7], 0 }
   0x2   :  { %9 = vsyncpa [#allocation5], 0  ;;  %s18_s11 = sshll.u32 %s266_s0, 4  ;;  %s237_s12 = smov [#allocation3]   ;;  %s19_s11 = int_to_ptr.hbm [resolvable:$true] %s18_s11 }
   0x3   :  { %s20_s13 = sshll.u32 %s237_s12, 4  ;;  %s35_s16 = sshll.u32 %s267_s1, 4  ;;  %s21_s13 = int_to_ptr.vmem [resolvable:$true] %s20_s13  ;;  %s36_s16 = int_to_ptr.hbm [resolvable:$true] %s35_s16 }
   0x4   :  { %s238_s17 = smov 128   ;;  %s239_s18 = smov 8  }
   0x5   :  { %26 = dma.hbm_to_vmem [thread:$0]  %s19_s11, 768, %s21_s13, [#allocation4], %s238_s17, %s238_s17, %s239_s18  }
   0x6   :  { %s240_s19 = smov [#allocation6]  }
   0x7   :  { %s37_s20 = sshll.u32 %s240_s19, 4  ;;  %s38_s20 = int_to_ptr.vmem [resolvable:$true] %s37_s20 }
   0x8   :  { %43 = dma.hbm_to_vmem [thread:$0]  %s36_s16, 768, %s38_s20, [#allocation7], %s238_s17, %s238_s17, %s239_s18  }
   0x9   :  { %231 = dma.done.wait [#allocation4], 768  }
   0xa   :  { %232 = vsyncadd [#allocation4], 4294966528 }
   0xb   :  { %233 = dma.done.wait [#allocation7], 768  }
   0xc   :  { %234 = vsyncadd [#allocation7], 4294966528  ;;  %v66_v0 = vld [vmem:[#allocation3] sm:$0xff]  ;;  %v67_v1 = vld [vmem:[#allocation3 + $0x8] sm:$0xff]  ;;  %s241_s0 = smov [#allocation8]   ;;  %s141_s23 = sshll.u32 %s268_s2, 4  ;;  %s142_s23 = int_to_ptr.hbm [resolvable:$true] %s141_s23 }
   0xd   :  { %v68_v2 = vld [vmem:[#allocation3 + $0x10] sm:$0xff]  ;;  %v69_v3 = vld [vmem:[#allocation3 + $0x18] sm:$0xff]  ;;  %v70_v4 = vld [vmem:[#allocation3 + $0x20] sm:$0xff]  ;;  %s139_s1 = sshll.u32 %s241_s0, 4  ;;  %s140_s1 = int_to_ptr.vmem [resolvable:$true] %s139_s1 }
   0xe   :  { %v72_v5 = vld [vmem:[#allocation6] sm:$0xff]  ;;  %v73_v6 = vld [vmem:[#allocation6 + $0x8] sm:$0xff]  ;;  %v74_v7 = vld [vmem:[#allocation6 + $0x10] sm:$0xff] }
   0xf   :  { %v75_v8 = vld [vmem:[#allocation6 + $0x18] sm:$0xff]  ;;  %v76_v9 = vld [vmem:[#allocation6 + $0x20] sm:$0xff]  ;;  %v78_v10 = vsub.f32 %v66_v0, %v72_v5  ;;  %v79_v11 = vsub.f32 %v67_v1, %v73_v6  ;;  %v80_v12 = vsub.f32 %v68_v2, %v74_v7  ;;  %v77_v14 = vld [vmem:[#allocation6 + $0x28] sm:$0xff] }
  0x10   :  { %v71_v13 = vld [vmem:[#allocation3 + $0x28] sm:$0xff]  ;;  %v81_v15 = vsub.f32 %v69_v3, %v75_v8  ;;  %v82_v16 = vsub.f32 %v70_v4, %v76_v9 }
  0x11   :  { %v90_v17 = vmul.f32 %v78_v10, %v78_v10  ;;  %v91_v18 = vmul.f32 %v79_v11, %v79_v11  ;;  %v92_v19 = vmul.f32 %v80_v12, %v80_v12  ;;  %v83_v20 = vsub.f32 %v71_v13, %v77_v14 }
  0x12   :  { %v93_v21 = vmul.f32 %v81_v15, %v81_v15  ;;  %v94_v23 = vmul.f32 %v82_v16, %v82_v16 }
  0x13   :  { %v117_v22 = vadd.f32 %v91_v18, %v90_v17  ;;  %v95_v25 = vmul.f32 %v83_v20, %v83_v20 }
  0x15   :  { %v118_v24 = vadd.f32 %v117_v22, %v92_v19 }
  0x17   :  { %v119_v26 = vadd.f32 %v118_v24, %v93_v21 }
  0x19   :  { %v120_v27 = vadd.f32 %v119_v26, %v94_v23 }
  0x1b   :  { %v121_v28 = vadd.f32 %v120_v27, %v95_v25 }
  0x1d   :  { %122 = vadd.xlane.f32.xlu0 %v121_v28 }
  0x90   :  { %v123_v29 = vpop.xlane.xlu0 %122 }
  0x91   :  { %v124_v30 = vrot.slane %v123_v29, 4 }
  0x93   :  { %v125_v31 = vadd.f32 %v124_v30, %v123_v29 }
  0x95   :  { %v126_v32 = vrot.slane %v125_v31, 2 }
  0x97   :  { %v127_v33 = vadd.f32 %v126_v32, %v125_v31 }
  0x99   :  { %v128_v34 = vrot.slane %v127_v33, 1 }
  0x9b   :  { %v129_v35 = vadd.f32 %v128_v34, %v127_v33 }
  0x9d   :  { %152 = vpush %v129_v35 }
  0xce   :  { %s153_s24 = spop %152 }
  0xcf   :  { %v131_v36 = vstv %s153_s24 }
  0xd0   :  { %133 = vst [vmem:[#allocation8] sm:$0xff] %v131_v36 }
  0xd1   :  { %144 = dma.vmem_to_hbm [thread:$0]  %s140_s1, 128, %s142_s23, [#allocation5]  }
  0xd2   :  { %235 = dma.done.wait [#allocation5], 128  }
  0xd3   :  { %236 = vsyncadd [#allocation5], 4294967168 }
  0xd4   :  { %149 = vsyncpa [#allocation4], 1 }
  0xd5   :  { %150 = vsyncpa [#allocation7], 1 }
  0xd6   :  { %151 = vsyncpa [#allocation5], 1 }

</bundles_post_ra>
